<compile_context>
chip_gen: v5e
topology: v5e:2x2
jax: 0.10.0
libtpu: 0.0.40
codegen_flags: <defaults>
</compile_context>

<pallas_src>
import jax
import jax.numpy as jnp
from jax.experimental import pallas as pl
from jax.experimental.pallas import tpu as pltpu


def _round_up(v: int, m: int) -> int:
    return ((v + m - 1) // m) * m


def _cdiv(a: int, b: int) -> int:
    return -(-a // b)


def _device_kind() -> str:
    try:
        return jax.devices()[0].device_kind.lower()
    except Exception:
        return ""


def _is_pre_v6() -> bool:
    """True for v5-and-older TPUs (128-deep MXU, no bf16 VPU/EUP path)."""
    k = _device_kind()
    return any(tag in k for tag in ("v2", "v3", "v4", "v5"))


def _vmem_limit_bytes() -> int:
    """Per-generation VMEM budget: ~85% of physical, capped (112 MiB) and floored (32 MiB)."""
    try:
        cap = int(pltpu.get_tpu_info().vmem_capacity_bytes)
    except Exception:
        cap = 64 * 1024 * 1024  # conservative: safe on every generation
    return max(32 * 1024 * 1024, min(int(cap * 0.85), 112 * 1024 * 1024))


def _nbrc_epilogue(a_pre, c_pre, u_pre, h_f32, eup_dtype):
    """nBRC gates + blend. Transcendental inputs optionally cast to eup_dtype
    (bf16 on v6e/v7x); the blend itself stays f32."""
    def tr(fn, v):
        return fn(v.astype(eup_dtype)).astype(jnp.float32)

    a = 1.0 + tr(jnp.tanh, a_pre)
    c = tr(jax.nn.sigmoid, c_pre)
    return c * h_f32 + (1.0 - c) * tr(jnp.tanh, u_pre + a * h_f32)


def _make_split_kernel(hp: int, eup_dtype):
    """Two MXU matmuls (x-side and h-side). Preferred on v5-and-older (K=128 MXU)."""
    def kernel(x_ref, h_ref, wx_ref, wh_ref, b_ref, out_ref):
        h_f32 = h_ref[...]
        x = x_ref[...]
        xp = jnp.dot(x, wx_ref[...], preferred_element_type=jnp.float32) + b_ref[...]
        hj = jnp.dot(h_f32.astype(x.dtype), wh_ref[...],
                     preferred_element_type=jnp.float32)
        a_pre = xp[:, :hp] + hj[:, :hp]
        c_pre = xp[:, hp:2 * hp] + hj[:, hp:2 * hp]
        u_pre = xp[:, 2 * hp:]
        out = _nbrc_epilogue(a_pre, c_pre, u_pre, h_f32, eup_dtype)
        out_ref[...] = out.astype(out_ref.dtype)

    return kernel


def _make_fused_kernel(hp: int, in_p: int, eup_dtype):
    """Single MXU matmul with K = In_p + Hp: [x | h] @ [[Ua|Uc|U],[Wa|Wc|0]].
    Fills the 256-deep MXU on v6e/v7x and removes the two slab adds."""
    def kernel(x_ref, h_ref, w_ref, b_ref, out_ref, xh_ref):
        h_f32 = h_ref[...]
        xh_ref[:, :in_p] = x_ref[...]
        xh_ref[:, in_p:] = h_f32.astype(xh_ref.dtype)
        acc = jnp.dot(xh_ref[...], w_ref[...],
                      preferred_element_type=jnp.float32) + b_ref[...]
        a_pre = acc[:, :hp]
        c_pre = acc[:, hp:2 * hp]
        u_pre = acc[:, 2 * hp:]
        out = _nbrc_epilogue(a_pre, c_pre, u_pre, h_f32, eup_dtype)
        out_ref[...] = out.astype(out_ref.dtype)

    return kernel


def nbrc_forward(x, h, params, *, compute_dtype=jnp.bfloat16, out_dtype=jnp.float32,
                 batch_tile=512, fuse_matmuls=None, eup_dtype=None):
    """x: (B, input_dims) f32, h: (B, hidden_dims) f32.
    params: dict name -> (weight, bias); weights in PyTorch (out, in) layout."""
    B, In = x.shape
    H = h.shape[1]
    pre_v6 = _is_pre_v6()
    f32_compute = jnp.dtype(compute_dtype) == jnp.dtype(jnp.float32)

    if fuse_matmuls is None:
        fuse_matmuls = not pre_v6
    if eup_dtype is None:
        eup_dtype = jnp.float32 if (pre_v6 or f32_compute) else jnp.bfloat16

    In_p = _round_up(In, 128)
    Hp = _round_up(H, 128)

    # Batch tiling: >=2 (up to 4) tiles once B >= 512 so v7x megacore gets work,
    # tiles kept large (grid-step amortization), rows rounded to the sublane
    # packing of the compute dtype (16 for bf16, 8 for f32).
    row_align = 16 if jnp.dtype(compute_dtype).itemsize == 2 else 8
    n_tiles = max(_cdiv(B, batch_tile), min(4, B // 256), 1)
    tb = _round_up(_cdiv(B, n_tiles), row_align)
    Bp = tb * n_tiles
    grid = (n_tiles,)

    def pad2(arr, rows, cols):
        return jnp.pad(arr, ((0, rows - arr.shape[0]), (0, cols - arr.shape[1])))

    def wpad(name, rows):
        w, _ = params[name]                 # (out, in) -> (in, out), zero-pad
        return pad2(w.T, rows, Hp)

    def bpad(b):
        return jnp.pad(b, (0, Hp - b.shape[0]))

    bias = jnp.concatenate([
        bpad(params["Ua"][1] + params["Wa"][1]),
        bpad(params["Uc"][1] + params["Wc"][1]),
        bpad(params["U"][1]),
    ]).reshape(1, 3 * Hp).astype(jnp.float32)

    w_x = jnp.concatenate([wpad("Ua", In_p), wpad("Uc", In_p), wpad("U", In_p)], axis=1)
    w_h2 = jnp.concatenate([wpad("Wa", Hp), wpad("Wc", Hp)], axis=1)

    x_p = pad2(x, Bp, In_p).astype(compute_dtype)
    h_p = pad2(h, Bp, Hp).astype(jnp.float32)

    if fuse_matmuls:
        w_h3 = jnp.concatenate([w_h2, jnp.zeros((Hp, Hp), jnp.float32)], axis=1)
        w_full = jnp.concatenate([w_x, w_h3], axis=0).astype(compute_dtype)
        kernel = _make_fused_kernel(Hp, In_p, eup_dtype)
        operands = (x_p, h_p, w_full, bias)
        scratch = [pltpu.VMEM((tb, In_p + Hp), compute_dtype)]
        resident_shapes = [(In_p + Hp, 3 * Hp), (1, 3 * Hp)]
    else:
        wx = w_x.astype(compute_dtype)
        wh = w_h2.astype(compute_dtype)
        kernel = _make_split_kernel(Hp, eup_dtype)
        operands = (x_p, h_p, wx, wh, bias)
        scratch = []
        resident_shapes = [(In_p, 3 * Hp), (Hp, 2 * Hp), (1, 3 * Hp)]

    def build_in_specs(single_buffer_resident: bool):
        kw = dict(pipeline_mode=pl.Buffered(1)) if single_buffer_resident else {}
        specs = [
            pl.BlockSpec((tb, In_p), lambda i: (i, 0)),   # x batch tile
            pl.BlockSpec((tb, Hp), lambda i: (i, 0)),     # h batch tile
        ]
        for shp in resident_shapes:                        # grid-invariant slabs
            specs.append(pl.BlockSpec(shp, lambda i: (0, 0), **kw))
        return specs

    out_spec = pl.BlockSpec((tb, Hp), lambda i: (i, 0))

    def run(single_buffer_resident: bool):
        return pl.pallas_call(
            kernel,
            out_shape=jax.ShapeDtypeStruct((Bp, Hp), out_dtype),
            grid=grid,
            in_specs=build_in_specs(single_buffer_resident),
            out_specs=out_spec,
            scratch_shapes=scratch,
            compiler_params=pltpu.CompilerParams(
                dimension_semantics=("parallel",),   # shard batch tiles across TCs (v7x)
                vmem_limit_bytes=_vmem_limit_bytes(),
            ),
        )(*operands)

    try:
        out_p = run(True)          # single-buffered resident weights (Buffered(1))
    except Exception:
        out_p = run(False)         # fallback: default double-buffered residency

    return out_p[:B, :H]


def init_linear(key, in_dims, out_dims):
    # PyTorch nn.Linear default init: U(-1/sqrt(in), 1/sqrt(in)) for weight & bias.
    kw, kb = jax.random.split(key)
    bound = 1.0 / jnp.sqrt(jnp.asarray(in_dims, jnp.float32))
    w = jax.random.uniform(kw, (out_dims, in_dims), jnp.float32, -bound, bound)
    b = jax.random.uniform(kb, (out_dims,), jnp.float32, -bound, bound)
    return w, b


def nbrc_reference(x, h, params, compute_dtype=None, eup_dtype=None):
    """Pure-JAX reference. Optionally mirrors the kernel's matmul-input cast
    (f32 accumulation) and transcendental-input cast."""
    def lin(name, v):
        w, b = params[name]
        wt = w.T
        if compute_dtype is not None:
            v = v.astype(compute_dtype)
            wt = wt.astype(compute_dtype)
        return jnp.dot(v, wt, preferred_element_type=jnp.float32) + b

    def tr(fn, v):
        if eup_dtype is None:
            return fn(v)
        return fn(v.astype(eup_dtype)).astype(jnp.float32)

    a = 1.0 + tr(jnp.tanh, lin("Ua", x) + lin("Wa", h))
    c = tr(jax.nn.sigmoid, lin("Uc", x) + lin("Wc", h))
    return c * h + (1.0 - c) * tr(jnp.tanh, lin("U", x) + a * h)


if __name__ == "__main__":
    input_dims, hidden_dims, batch = 16, 32, 8

    root = jax.random.PRNGKey(0)
    kx, kh, k_ua, k_wa, k_uc, k_wc, k_u = jax.random.split(root, 7)

    params = {
        "Ua": init_linear(k_ua, input_dims, hidden_dims),
        "Wa": init_linear(k_wa, hidden_dims, hidden_dims),
        "Uc": init_linear(k_uc, input_dims, hidden_dims),
        "Wc": init_linear(k_wc, hidden_dims, hidden_dims),
        "U": init_linear(k_u, input_dims, hidden_dims),
    }

    x = jax.random.normal(kx, (batch, input_dims), jnp.float32)
    h = jax.random.normal(kh, (batch, hidden_dims), jnp.float32)

    ref_f32 = nbrc_reference(x, h, params)

    # 1) Exact-semantics check: split-matmul path, full f32 everywhere.
    out_a = jax.block_until_ready(nbrc_forward(
        x, h, params, compute_dtype=jnp.float32, eup_dtype=jnp.float32,
        fuse_matmuls=False))
    assert out_a.shape == (batch, hidden_dims)
    assert jnp.allclose(out_a, ref_f32, atol=1e-5, rtol=1e-5)

    # 2) Fused single-matmul path (K = In_p + Hp), full f32: only accumulation
    #    order differs from the reference.
    out_b = jax.block_until_ready(nbrc_forward(
        x, h, params, compute_dtype=jnp.float32, eup_dtype=jnp.float32,
        fuse_matmuls=True))
    assert out_b.shape == (batch, hidden_dims)
    assert jnp.allclose(out_b, ref_f32, atol=1e-4, rtol=1e-4)

    # 3) Fast default path: bf16 matmul inputs + f32 accumulation; bf16
    #    transcendental inputs on v6e/v7x (f32 on v5-and-older).
    out_c = jax.block_until_ready(nbrc_forward(x, h, params))
    eup_used = jnp.float32 if _is_pre_v6() else jnp.bfloat16
    ref_matched = nbrc_reference(x, h, params, compute_dtype=jnp.bfloat16,
                                 eup_dtype=eup_used)
    assert out_c.shape == (batch, hidden_dims)
    assert jnp.allclose(out_c, ref_matched, atol=5e-2, rtol=5e-2)
    # Loose sanity check against the full-precision reference (bf16 rounding only).
    assert jnp.allclose(out_c, ref_f32, atol=1.5e-1, rtol=1.5e-1)

    print("KERNEL_OK")
</pallas_src>

<mosaic_0001>
module attributes {stable_mosaic.version = 11 : i64} {
  func.func @kernel(%arg0: i32, %arg1: memref<8x128xf32, #tpu.memory_space<vmem>>, %arg2: memref<8x128xf32, #tpu.memory_space<vmem>>, %arg3: memref<128x384xf32, #tpu.memory_space<vmem>>, %arg4: memref<128x256xf32, #tpu.memory_space<vmem>>, %arg5: memref<1x384xf32, #tpu.memory_space<vmem>>, %arg6: memref<8x128xf32, #tpu.memory_space<vmem>>) attributes {dimension_semantics = [#tpu.dimension_semantics<parallel>], iteration_bounds = array<i64: 1>, scalar_prefetch = 0 : i64, scratch_operands = 0 : i64, tpu.core_type = #tpu.core_type<tc>, window_params = [{transform_indices = @transform_0, window_bounds = array<i64: 8, 128>}, {transform_indices = @transform_1, window_bounds = array<i64: 8, 128>}, {pipeline_mode = #tpu.pipeline_mode<synchronous>, transform_indices = @transform_2, window_bounds = array<i64: 128, 384>}, {pipeline_mode = #tpu.pipeline_mode<synchronous>, transform_indices = @transform_3, window_bounds = array<i64: 128, 256>}, {pipeline_mode = #tpu.pipeline_mode<synchronous>, transform_indices = @transform_4, window_bounds = array<i64: 1, 384>}, {transform_indices = @transform_5, window_bounds = array<i64: 8, 128>}]} {
    %c0 = arith.constant 0 : index
    %c0_0 = arith.constant 0 : index
    %0 = vector.load %arg2[%c0, %c0_0] : memref<8x128xf32, #tpu.memory_space<vmem>>, vector<8x128xf32>
    %c0_1 = arith.constant 0 : index
    %c0_2 = arith.constant 0 : index
    %1 = vector.load %arg1[%c0_1, %c0_2] : memref<8x128xf32, #tpu.memory_space<vmem>>, vector<8x128xf32>
    %c0_3 = arith.constant 0 : index
    %c0_4 = arith.constant 0 : index
    %2 = vector.load %arg3[%c0_3, %c0_4] : memref<128x384xf32, #tpu.memory_space<vmem>>, vector<128x384xf32>
    %cst = arith.constant dense<0.000000e+00> : vector<8x384xf32>
    %3 = tpu.matmul %1, %2, %cst {dimension_numbers = #tpu.dot_dimension_numbers<[1], [0], [0], [1], [0, 0, 1, 1], [], []>} : vector<8x128xf32>, vector<128x384xf32>, vector<8x384xf32> -> vector<8x384xf32>
    %c0_5 = arith.constant 0 : index
    %c0_6 = arith.constant 0 : index
    %4 = vector.load %arg5[%c0_5, %c0_6] : memref<1x384xf32, #tpu.memory_space<vmem>>, vector<1x384xf32>
    %5 = vector.broadcast %4 : vector<1x384xf32> to vector<8x384xf32>
    %6 = arith.addf %3, %5 : vector<8x384xf32>
    %c0_7 = arith.constant 0 : index
    %c0_8 = arith.constant 0 : index
    %7 = vector.load %arg4[%c0_7, %c0_8] : memref<128x256xf32, #tpu.memory_space<vmem>>, vector<128x256xf32>
    %cst_9 = arith.constant dense<0.000000e+00> : vector<8x256xf32>
    %8 = tpu.matmul %0, %7, %cst_9 {dimension_numbers = #tpu.dot_dimension_numbers<[1], [0], [0], [1], [0, 0, 1, 1], [], []>} : vector<8x128xf32>, vector<128x256xf32>, vector<8x256xf32> -> vector<8x256xf32>
    %9 = vector.extract_strided_slice %6 {offsets = [0, 0], sizes = [8, 128], strides = [1, 1]} : vector<8x384xf32> to vector<8x128xf32>
    %10 = vector.extract_strided_slice %8 {offsets = [0, 0], sizes = [8, 128], strides = [1, 1]} : vector<8x256xf32> to vector<8x128xf32>
    %11 = arith.addf %9, %10 : vector<8x128xf32>
    %12 = vector.extract_strided_slice %6 {offsets = [0, 128], sizes = [8, 128], strides = [1, 1]} : vector<8x384xf32> to vector<8x128xf32>
    %13 = vector.extract_strided_slice %8 {offsets = [0, 128], sizes = [8, 128], strides = [1, 1]} : vector<8x256xf32> to vector<8x128xf32>
    %14 = arith.addf %12, %13 : vector<8x128xf32>
    %15 = vector.extract_strided_slice %6 {offsets = [0, 256], sizes = [8, 128], strides = [1, 1]} : vector<8x384xf32> to vector<8x128xf32>
    %16 = math.tanh %11 : vector<8x128xf32>
    %cst_10 = arith.constant 1.000000e+00 : f32
    %17 = vector.broadcast %cst_10 : f32 to vector<8x128xf32>
    %18 = arith.addf %17, %16 : vector<8x128xf32>
    %19 = arith.negf %14 : vector<8x128xf32>
    %20 = math.exp %19 : vector<8x128xf32>
    %cst_11 = arith.constant 1.000000e+00 : f32
    %21 = vector.broadcast %cst_11 : f32 to vector<8x128xf32>
    %22 = arith.addf %21, %20 : vector<8x128xf32>
    %23 = arith.divf %21, %22 : vector<8x128xf32>
    %24 = arith.mulf %23, %0 : vector<8x128xf32>
    %cst_12 = arith.constant 1.000000e+00 : f32
    %25 = vector.broadcast %cst_12 : f32 to vector<8x128xf32>
    %26 = arith.subf %25, %23 : vector<8x128xf32>
    %27 = arith.mulf %18, %0 : vector<8x128xf32>
    %28 = arith.addf %15, %27 : vector<8x128xf32>
    %29 = math.tanh %28 : vector<8x128xf32>
    %30 = arith.mulf %26, %29 : vector<8x128xf32>
    %31 = arith.addf %24, %30 : vector<8x128xf32>
    %c0_13 = arith.constant 0 : index
    %c0_14 = arith.constant 0 : index
    %32 = vector.load %arg6[%c0_13, %c0_14] : memref<8x128xf32, #tpu.memory_space<vmem>>, vector<8x128xf32>
    tpu.vector_store %arg6[%c0_13, %c0_14], %31 {strides = array<i32>} : memref<8x128xf32, #tpu.memory_space<vmem>>, vector<8x128xf32>,
    return
  }
  func.func @transform_0(%arg0: i32) -> (i32, i32) {
    %c0_i32 = arith.constant 0 : i32
    %c0_i32_0 = arith.constant 0 : i32
    return %arg0, %c0_i32 : i32, i32
  }
  func.func @transform_1(%arg0: i32) -> (i32, i32) {
    %c0_i32 = arith.constant 0 : i32
    %c0_i32_0 = arith.constant 0 : i32
    return %arg0, %c0_i32 : i32, i32
  }
  func.func @transform_2(%arg0: i32) -> (i32, i32) {
    %c0_i32 = arith.constant 0 : i32
    %c0_i32_0 = arith.constant 0 : i32
    %c0_i32_1 = arith.constant 0 : i32
    return %c0_i32, %c0_i32_0 : i32, i32
  }
  func.func @transform_3(%arg0: i32) -> (i32, i32) {
    %c0_i32 = arith.constant 0 : i32
    %c0_i32_0 = arith.constant 0 : i32
    %c0_i32_1 = arith.constant 0 : i32
    return %c0_i32, %c0_i32_0 : i32, i32
  }
  func.func @transform_4(%arg0: i32) -> (i32, i32) {
    %c0_i32 = arith.constant 0 : i32
    %c0_i32_0 = arith.constant 0 : i32
    %c0_i32_1 = arith.constant 0 : i32
    return %c0_i32, %c0_i32_0 : i32, i32
  }
  func.func @transform_5(%arg0: i32) -> (i32, i32) {
    %c0_i32 = arith.constant 0 : i32
    %c0_i32_0 = arith.constant 0 : i32
    return %arg0, %c0_i32 : i32, i32
  }
}

module attributes {stable_mosaic.version = 11 : i64} {
  func.func @kernel(%arg0: i32, %arg1: memref<8x128xf32, #tpu.memory_space<vmem>>, %arg2: memref<8x128xf32, #tpu.memory_space<vmem>>, %arg3: memref<128x384xf32, #tpu.memory_space<vmem>>, %arg4: memref<128x256xf32, #tpu.memory_space<vmem>>, %arg5: memref<1x384xf32, #tpu.memory_space<vmem>>, %arg6: memref<8x128xf32, #tpu.memory_space<vmem>>) attributes {dimension_semantics = [#tpu.dimension_semantics<parallel>], iteration_bounds = array<i64: 1>, scalar_prefetch = 0 : i64, scratch_operands = 0 : i64, tpu.core_type = #tpu.core_type<tc>, window_params = [{transform_indices = @transform_0, window_bounds = array<i64: 8, 128>}, {transform_indices = @transform_1, window_bounds = array<i64: 8, 128>}, {pipeline_mode = #tpu.pipeline_mode<synchronous>, transform_indices = @transform_2, window_bounds = array<i64: 128, 384>}, {pipeline_mode = #tpu.pipeline_mode<synchronous>, transform_indices = @transform_3, window_bounds = array<i64: 128, 256>}, {pipeline_mode = #tpu.pipeline_mode<synchronous>, transform_indices = @transform_4, window_bounds = array<i64: 1, 384>}, {transform_indices = @transform_5, window_bounds = array<i64: 8, 128>}]} {
    %c0 = arith.constant 0 : index
    %c0_0 = arith.constant 0 : index
    %0 = vector.load %arg2[%c0, %c0_0] : memref<8x128xf32, #tpu.memory_space<vmem>>, vector<8x128xf32>
    %c0_1 = arith.constant 0 : index
    %c0_2 = arith.constant 0 : index
    %1 = vector.load %arg1[%c0_1, %c0_2] : memref<8x128xf32, #tpu.memory_space<vmem>>, vector<8x128xf32>
    %c0_3 = arith.constant 0 : index
    %c0_4 = arith.constant 0 : index
    %2 = vector.load %arg3[%c0_3, %c0_4] : memref<128x384xf32, #tpu.memory_space<vmem>>, vector<128x384xf32>
    %cst = arith.constant dense<0.000000e+00> : vector<8x384xf32>
    %3 = tpu.matmul %1, %2, %cst {dimension_numbers = #tpu.dot_dimension_numbers<[1], [0], [0], [1], [0, 0, 1, 1], [], []>} : vector<8x128xf32>, vector<128x384xf32>, vector<8x384xf32> -> vector<8x384xf32>
    %c0_5 = arith.constant 0 : index
    %c0_6 = arith.constant 0 : index
    %4 = vector.load %arg5[%c0_5, %c0_6] : memref<1x384xf32, #tpu.memory_space<vmem>>, vector<1x384xf32>
    %5 = vector.broadcast %4 : vector<1x384xf32> to vector<8x384xf32>
    %6 = arith.addf %3, %5 : vector<8x384xf32>
    %c0_7 = arith.constant 0 : index
    %c0_8 = arith.constant 0 : index
    %7 = vector.load %arg4[%c0_7, %c0_8] : memref<128x256xf32, #tpu.memory_space<vmem>>, vector<128x256xf32>
    %cst_9 = arith.constant dense<0.000000e+00> : vector<8x256xf32>
    %8 = tpu.matmul %0, %7, %cst_9 {dimension_numbers = #tpu.dot_dimension_numbers<[1], [0], [0], [1], [0, 0, 1, 1], [], []>} : vector<8x128xf32>, vector<128x256xf32>, vector<8x256xf32> -> vector<8x256xf32>
    %9 = vector.extract_strided_slice %6 {offsets = [0, 0], sizes = [8, 128], strides = [1, 1]} : vector<8x384xf32> to vector<8x128xf32>
    %10 = vector.extract_strided_slice %8 {offsets = [0, 0], sizes = [8, 128], strides = [1, 1]} : vector<8x256xf32> to vector<8x128xf32>
    %11 = arith.addf %9, %10 : vector<8x128xf32>
    %12 = vector.extract_strided_slice %6 {offsets = [0, 128], sizes = [8, 128], strides = [1, 1]} : vector<8x384xf32> to vector<8x128xf32>
    %13 = vector.extract_strided_slice %8 {offsets = [0, 128], sizes = [8, 128], strides = [1, 1]} : vector<8x256xf32> to vector<8x128xf32>
    %14 = arith.addf %12, %13 : vector<8x128xf32>
    %15 = vector.extract_strided_slice %6 {offsets = [0, 256], sizes = [8, 128], strides = [1, 1]} : vector<8x384xf32> to vector<8x128xf32>
    %16 = math.tanh %11 : vector<8x128xf32>
    %cst_10 = arith.constant 1.000000e+00 : f32
    %17 = vector.broadcast %cst_10 : f32 to vector<8x128xf32>
    %18 = arith.addf %17, %16 : vector<8x128xf32>
    %19 = arith.negf %14 : vector<8x128xf32>
    %20 = math.exp %19 : vector<8x128xf32>
    %cst_11 = arith.constant 1.000000e+00 : f32
    %21 = vector.broadcast %cst_11 : f32 to vector<8x128xf32>
    %22 = arith.addf %21, %20 : vector<8x128xf32>
    %23 = arith.divf %21, %22 : vector<8x128xf32>
    %24 = arith.mulf %23, %0 : vector<8x128xf32>
    %cst_12 = arith.constant 1.000000e+00 : f32
    %25 = vector.broadcast %cst_12 : f32 to vector<8x128xf32>
    %26 = arith.subf %25, %23 : vector<8x128xf32>
    %27 = arith.mulf %18, %0 : vector<8x128xf32>
    %28 = arith.addf %15, %27 : vector<8x128xf32>
    %29 = math.tanh %28 : vector<8x128xf32>
    %30 = arith.mulf %26, %29 : vector<8x128xf32>
    %31 = arith.addf %24, %30 : vector<8x128xf32>
    %c0_13 = arith.constant 0 : index
    %c0_14 = arith.constant 0 : index
    %32 = vector.load %arg6[%c0_13, %c0_14] : memref<8x128xf32, #tpu.memory_space<vmem>>, vector<8x128xf32>
    tpu.vector_store %arg6[%c0_13, %c0_14], %31 {strides = array<i32>} : memref<8x128xf32, #tpu.memory_space<vmem>>, vector<8x128xf32>,
    return
  }
  func.func @transform_0(%arg0: i32) -> (i32, i32) {
    %c0_i32 = arith.constant 0 : i32
    %c0_i32_0 = arith.constant 0 : i32
    return %arg0, %c0_i32 : i32, i32
  }
  func.func @transform_1(%arg0: i32) -> (i32, i32) {
    %c0_i32 = arith.constant 0 : i32
    %c0_i32_0 = arith.constant 0 : i32
    return %arg0, %c0_i32 : i32, i32
  }
  func.func @transform_2(%arg0: i32) -> (i32, i32) {
    %c0_i32 = arith.constant 0 : i32
    %c0_i32_0 = arith.constant 0 : i32
    %c0_i32_1 = arith.constant 0 : i32
    return %c0_i32, %c0_i32_0 : i32, i32
  }
  func.func @transform_3(%arg0: i32) -> (i32, i32) {
    %c0_i32 = arith.constant 0 : i32
    %c0_i32_0 = arith.constant 0 : i32
    %c0_i32_1 = arith.constant 0 : i32
    return %c0_i32, %c0_i32_0 : i32, i32
  }
  func.func @transform_4(%arg0: i32) -> (i32, i32) {
    %c0_i32 = arith.constant 0 : i32
    %c0_i32_0 = arith.constant 0 : i32
    %c0_i32_1 = arith.constant 0 : i32
    return %c0_i32, %c0_i32_0 : i32, i32
  }
  func.func @transform_5(%arg0: i32) -> (i32, i32) {
    %c0_i32 = arith.constant 0 : i32
    %c0_i32_0 = arith.constant 0 : i32
    return %arg0, %c0_i32 : i32, i32
  }
}

</mosaic_0001>

<bundles_post_ra>
// kernel: tpu_custom_call.1
= control target key start
LH: loop header
LB: loop body
LE: loop exit
PB: predicated region body
PF: predicated region fallthrough
CT: control target
= control target key end

     0   :  { %10 = vsyncpa [#allocation3], 0  ;;  %s529_s0 = inlined_call_operand.hbm [shape: f32[8,128], index: 0, kind: input, shape index: {}]   ;;  %s530_s1 = inlined_call_operand.hbm [shape: f32[8,128], index: 1, kind: input, shape index: {}]   ;;  %s531_s2 = inlined_call_operand.hbm [shape: f32[128,384], index: 2, kind: input, shape index: {}]   ;;  %s532_s3 = inlined_call_operand.hbm [shape: f32[128,256], index: 3, kind: input, shape index: {}]   ;;  %s533_s4 = inlined_call_operand.vmem [shape: f32[1,384], index: 4, kind: input, shape index: {}]   ;;  %s534_s5 = inlined_call_operand.hbm [shape: f32[8,128], index: 5, kind: output, shape index: {}]  }
   0x1   :  { %11 = vsyncpa [#allocation6], 0 }
   0x2   :  { %12 = vsyncpa [#allocation9], 0  ;;  %s30_s20 = sshll.u32 %s530_s1, 4  ;;  %s31_s20 = int_to_ptr.hbm [resolvable:$true] %s30_s20 }
   0x3   :  { %13 = vsyncpa [#allocation4], 0  ;;  %s466_s21 = smov [#allocation5]   ;;  %s19_s25 = sshll.u32 %s529_s0, 4  ;;  %s20_s25 = int_to_ptr.hbm [resolvable:$true] %s19_s25 }
   0x4   :  { %s32_s22 = sshll.u32 %s466_s21, 4  ;;  %s467_s26 = smov [#allocation2]   ;;  %s33_s22 = int_to_ptr.vmem [resolvable:$true] %s32_s22 }
   0x5   :  { %35 = dma.hbm_to_vmem [thread:$0]  %s31_s20, 128, %s33_s22, [#allocation6]  }
   0x6   :  { %s21_s27 = sshll.u32 %s467_s26, 4  ;;  %s40_s30 = sshll.u32 %s531_s2, 4  ;;  %s22_s27 = int_to_ptr.vmem [resolvable:$true] %s21_s27  ;;  %s41_s30 = int_to_ptr.hbm [resolvable:$true] %s40_s30 }
   0x7   :  { %24 = dma.hbm_to_vmem [thread:$0]  %s20_s25, 128, %s22_s27, [#allocation3]  }
   0x8   :  { %s468_s1 = smov [#allocation7]   ;;  %s53_s9 = sshll.u32 %s532_s3, 4  ;;  %s54_s9 = int_to_ptr.hbm [resolvable:$true] %s53_s9 }
   0x9   :  { %s42_s6 = sshll.u32 %s468_s1, 4  ;;  %s469_s10 = smov 384   ;;  %s43_s6 = int_to_ptr.vmem [resolvable:$true] %s42_s6 }
   0xa   :  { %s470_s0 = smov 24   ;;  %s471_s11 = smov [#allocation8]  }
   0xb   :  { %48 = dma.hbm_to_vmem [thread:$0]  %s41_s30, 6144, %s43_s6, [#allocation6], %s469_s10, %s469_s10, %s470_s0  }
   0xc   :  { %s55_s12 = sshll.u32 %s471_s11, 4  ;;  %s472_s13 = smov 256   ;;  %s56_s12 = int_to_ptr.vmem [resolvable:$true] %s55_s12 }
   0xd   :  { %s473_s14 = smov 16  }
   0xe   :  { %61 = dma.hbm_to_vmem [thread:$0]  %s54_s9, 4096, %s56_s12, [#allocation9], %s472_s13, %s472_s13, %s473_s14  }
   0xf   :  { %458 = dma.done.wait [#allocation3], 128  }
  0x10   :  { %459 = vsyncadd [#allocation3], 4294967168 }
  0x11   :  { %460 = dma.done.wait [#allocation6], 6272  }
  0x12   :  { %461 = vsyncadd [#allocation6], 4294961024 }
  0x13   :  { %462 = dma.done.wait [#allocation9], 4096  }
  0x14   :  { %463 = vsyncadd [#allocation9], 4294963200  ;;  %v127_v0 = vld [vmem:[#allocation7 + $0x168] sm:$0xff]  ;;  %v124_v1 = vld [vmem:[#allocation7 + $0x150] sm:$0xff]  ;;  %s308_s18 = sshll.u32 %s534_s5, 4  ;;  %s309_s18 = int_to_ptr.hbm [resolvable:$true] %s308_s18 }
  0x15   :  { %138 = vmatpush.msra.mxu0 %v127_v0  ;;  %v121_v2 = vld [vmem:[#allocation7 + $0x138] sm:$0xff]  ;;  %v228_v3 = vld [vmem:[#allocation8 + $0xf0] sm:$0xff]  ;;  %v118_v4 = vld [vmem:[#allocation7 + $0x120] sm:$0xff] }
  0x16   :  { %230 = vmatpush.msra.mxu3 %v228_v3  ;;  %v226_v5 = vld [vmem:[#allocation8 + $0xe0] sm:$0xff]  ;;  %v224_v6 = vld [vmem:[#allocation8 + $0xd0] sm:$0xff]  ;;  %v115_v7 = vld [vmem:[#allocation7 + $0x108] sm:$0xff] }
  0x17   :  { %139 = vmatpush.msra.mxu0 %v124_v1  ;;  %v128_v8 = vld [vmem:[#allocation7 + $0x170] sm:$0xff]  ;;  %v222_v9 = vld [vmem:[#allocation8 + $0xc0] sm:$0xff]  ;;  %v129_v10 = vld [vmem:[#allocation7 + $0x178] sm:$0xff] }
  0x18   :  { %231 = vmatpush.msra.mxu3 %v226_v5  ;;  %158 = vmatpush.msra.mxu1 %v128_v8  ;;  %v112_v11 = vld [vmem:[#allocation7 + $0xf0] sm:$0xff]  ;;  %v125_v12 = vld [vmem:[#allocation7 + $0x158] sm:$0xff]  ;;  %v126_v14 = vld [vmem:[#allocation7 + $0x160] sm:$0xff] }
  0x19   :  { %140 = vmatpush.msra.mxu0 %v121_v2  ;;  %178 = vmatpush.msra.mxu2 %v129_v10  ;;  %v220_v13 = vld [vmem:[#allocation8 + $0xb0] sm:$0xff]  ;;  %v122_v15 = vld [vmem:[#allocation7 + $0x140] sm:$0xff]  ;;  %v109_v16 = vld [vmem:[#allocation7 + $0xd8] sm:$0xff] }
  0x1a   :  { %232 = vmatpush.msra.mxu3 %v224_v6  ;;  %159 = vmatpush.msra.mxu1 %v125_v12  ;;  %v123_v17 = vld [vmem:[#allocation7 + $0x148] sm:$0xff]  ;;  %v218_v19 = vld [vmem:[#allocation8 + $0xa0] sm:$0xff]  ;;  %v120_v20 = vld [vmem:[#allocation7 + $0x130] sm:$0xff] }
  0x1b   :  { %141 = vmatpush.msra.mxu0 %v118_v4  ;;  %179 = vmatpush.msra.mxu2 %v126_v14  ;;  %v119_v18 = vld [vmem:[#allocation7 + $0x128] sm:$0xff]  ;;  %v106_v21 = vld [vmem:[#allocation7 + $0xc0] sm:$0xff]  ;;  %v116_v22 = vld [vmem:[#allocation7 + $0x110] sm:$0xff] }
  0x1c   :  { %233 = vmatpush.msra.mxu3 %v222_v9  ;;  %160 = vmatpush.msra.mxu1 %v122_v15  ;;  %v216_v23 = vld [vmem:[#allocation8 + $0x90] sm:$0xff]  ;;  %v117_v24 = vld [vmem:[#allocation7 + $0x118] sm:$0xff]  ;;  %v103_v25 = vld [vmem:[#allocation7 + $0xa8] sm:$0xff] }
  0x1d   :  { %142 = vmatpush.msra.mxu0 %v115_v7  ;;  %180 = vmatpush.msra.mxu2 %v123_v17  ;;  %v113_v26 = vld [vmem:[#allocation7 + $0xf8] sm:$0xff]  ;;  %v214_v27 = vld [vmem:[#allocation8 + $0x80] sm:$0xff]  ;;  %v100_v29 = vld [vmem:[#allocation7 + $0x90] sm:$0xff] }
  0x1e   :  { %234 = vmatpush.msra.mxu3 %v220_v13  ;;  %161 = vmatpush.msra.mxu1 %v119_v18  ;;  %v114_v28 = vld [vmem:[#allocation7 + $0x100] sm:$0xff]  ;;  %v212_v31 = vld [vmem:[#allocation8 + $0x70] sm:$0xff]  ;;  %v111_v32 = vld [vmem:[#allocation7 + $0xe8] sm:$0xff] }
  0x1f   :  { %143 = vmatpush.msra.mxu0 %v112_v11  ;;  %181 = vmatpush.msra.mxu2 %v120_v20  ;;  %v110_v30 = vld [vmem:[#allocation7 + $0xe0] sm:$0xff]  ;;  %v97_v33 = vld [vmem:[#allocation7 + $0x78] sm:$0xff]  ;;  %v107_v34 = vld [vmem:[#allocation7 + $0xc8] sm:$0xff] }
  0x20   :  { %235 = vmatpush.msra.mxu3 %v218_v19  ;;  %162 = vmatpush.msra.mxu1 %v116_v22  ;;  %v210_v35 = vld [vmem:[#allocation8 + $0x60] sm:$0xff]  ;;  %v108_v36 = vld [vmem:[#allocation7 + $0xd0] sm:$0xff]  ;;  %v105_v40 = vld [vmem:[#allocation7 + $0xb8] sm:$0xff] }
  0x21   :  { %144 = vmatpush.msra.mxu0 %v109_v16  ;;  %182 = vmatpush.msra.mxu2 %v117_v24  ;;  %v94_v37 = vld [vmem:[#allocation7 + $0x60] sm:$0xff]  ;;  %v104_v38 = vld [vmem:[#allocation7 + $0xb0] sm:$0xff]  ;;  %v91_v41 = vld [vmem:[#allocation7 + $0x48] sm:$0xff] }
  0x22   :  { %236 = vmatpush.msra.mxu3 %v216_v23  ;;  %163 = vmatpush.msra.mxu1 %v113_v26  ;;  %v208_v39 = vld [vmem:[#allocation8 + $0x50] sm:$0xff]  ;;  %v101_v42 = vld [vmem:[#allocation7 + $0x98] sm:$0xff]  ;;  %v206_v43 = vld [vmem:[#allocation8 + $0x40] sm:$0xff] }
  0x23   :  { %145 = vmatpush.msra.mxu0 %v106_v21  ;;  %183 = vmatpush.msra.mxu2 %v114_v28  ;;  %v102_v44 = vld [vmem:[#allocation7 + $0xa0] sm:$0xff]  ;;  %v88_v45 = vld [vmem:[#allocation7 + $0x30] sm:$0xff]  ;;  %v99_v48 = vld [vmem:[#allocation7 + $0x88] sm:$0xff] }
  0x24   :  { %237 = vmatpush.msra.mxu3 %v214_v27  ;;  %164 = vmatpush.msra.mxu1 %v110_v30  ;;  %v98_v46 = vld [vmem:[#allocation7 + $0x80] sm:$0xff]  ;;  %v204_v47 = vld [vmem:[#allocation8 + $0x30] sm:$0xff]  ;;  %v85_v49 = vld [vmem:[#allocation7 + $0x18] sm:$0xff] }
  0x25   :  { %146 = vmatpush.msra.mxu0 %v103_v25  ;;  %184 = vmatpush.msra.mxu2 %v111_v32  ;;  %v95_v50 = vld [vmem:[#allocation7 + $0x68] sm:$0xff]  ;;  %v202_v51 = vld [vmem:[#allocation8 + $0x20] sm:$0xff]  ;;  %v96_v52 = vld [vmem:[#allocation7 + $0x70] sm:$0xff] }
  0x26   :  { %238 = vmatpush.msra.mxu3 %v212_v31  ;;  %165 = vmatpush.msra.mxu1 %v107_v34  ;;  %v82_v53 = vld [vmem:[#allocation7] sm:$0xff]  ;;  %v92_v54 = vld [vmem:[#allocation7 + $0x50] sm:$0xff]  ;;  %v229_v55 = vld [vmem:[#allocation8 + $0xf8] sm:$0xff] }
  0x27   :  { %147 = vmatpush.msra.mxu0 %v100_v29  ;;  %185 = vmatpush.msra.mxu2 %v108_v36  ;;  %v200_v56 = vld [vmem:[#allocation8 + $0x10] sm:$0xff]  ;;  %v93_v58 = vld [vmem:[#allocation7 + $0x58] sm:$0xff]  ;;  %v227_v59 = vld [vmem:[#allocation8 + $0xe8] sm:$0xff] }
  0x28   :  { %239 = vmatpush.msra.mxu3 %v210_v35  ;;  %166 = vmatpush.msra.mxu1 %v104_v38  ;;  %v81_v57 = vld [vmem:[#allocation2] sm:$0xff]  ;;  %v198_v60 = vld [vmem:[#allocation8] sm:$0xff]  ;;  %v517_v61 = vld [vmem:[#allocation5] sm:$0xff] }
  0x29   :  { %148 = vmatpush.msra.mxu0 %v97_v33  ;;  %186 = vmatpush.msra.mxu2 %v105_v40  ;;  %v89_v62 = vld [vmem:[#allocation7 + $0x38] sm:$0xff]  ;;  %v90_v0 = vld [vmem:[#allocation7 + $0x40] sm:$0xff]  ;;  %v223_v2 = vld [vmem:[#allocation8 + $0xc8] sm:$0xff] }
  0x2a   :  { %240 = vmatpush.msra.mxu3 %v208_v39  ;;  %167 = vmatpush.msra.mxu1 %v101_v42  ;;  %v225_v63 = vld [vmem:[#allocation8 + $0xd8] sm:$0xff]  ;;  %v86_v1 = vld [vmem:[#allocation7 + $0x20] sm:$0xff]  ;;  %v87_v3 = vld [vmem:[#allocation7 + $0x28] sm:$0xff] }
  0x2b   :  { %149 = vmatpush.msra.mxu0 %v94_v37  ;;  %187 = vmatpush.msra.mxu2 %v102_v44  ;;  %v83_v4 = vld [vmem:[#allocation7 + $0x8] sm:$0xff]  ;;  %v221_v5 = vld [vmem:[#allocation8 + $0xb8] sm:$0xff]  ;;  %v84_v6 = vld [vmem:[#allocation7 + $0x10] sm:$0xff] }
  0x2c   :  { %241 = vmatpush.msra.mxu3 %v206_v43  ;;  %168 = vmatpush.msra.mxu1 %v98_v46  ;;  %v219_v7 = vld [vmem:[#allocation8 + $0xa8] sm:$0xff]  ;;  %v217_v8 = vld [vmem:[#allocation8 + $0x98] sm:$0xff]  ;;  %v130_v18 = vld [vmem:[%s533_s4] sm:$0x7]  ;;  %s474_s4 = smov [#allocation10]  }
  0x2d   :  { %150 = vmatpush.msra.mxu0 %v91_v41  ;;  %188 = vmatpush.msra.mxu2 %v99_v48  ;;  %v215_v9 = vld [vmem:[#allocation8 + $0x88] sm:$0xff]  ;;  %v213_v10 = vld [vmem:[#allocation8 + $0x78] sm:$0xff]  ;;  %v132_v20 = vperm.slane %v130_v18, 0  ;;  %v133_v21 = vperm.slane %v130_v18, 1  ;;  %v134_v34 = vperm.slane %v130_v18, 2  ;;  %s306_s15 = sshll.u32 %s474_s4, 4  ;;  %s307_s15 = int_to_ptr.vmem [resolvable:$true] %s306_s15 }
  0x2e   :  { %242 = vmatpush.msra.mxu3 %v204_v47  ;;  %169 = vmatpush.msra.mxu1 %v95_v50  ;;  %v211_v11 = vld [vmem:[#allocation8 + $0x68] sm:$0xff]  ;;  %v209_v12 = vld [vmem:[#allocation8 + $0x58] sm:$0xff] }
  0x2f   :  { %151 = vmatpush.msra.mxu0 %v88_v45  ;;  %189 = vmatpush.msra.mxu2 %v96_v52  ;;  %v207_v13 = vld [vmem:[#allocation8 + $0x48] sm:$0xff]  ;;  %v205_v14 = vld [vmem:[#allocation8 + $0x38] sm:$0xff] }
  0x30   :  { %243 = vmatpush.msra.mxu3 %v202_v51  ;;  %170 = vmatpush.msra.mxu1 %v92_v54  ;;  %v203_v15 = vld [vmem:[#allocation8 + $0x28] sm:$0xff]  ;;  %v201_v16 = vld [vmem:[#allocation8 + $0x18] sm:$0xff] }
  0x31   :  { %152 = vmatpush.msra.mxu0 %v85_v49  ;;  %190 = vmatpush.msra.mxu2 %v93_v58  ;;  %v199_v17 = vld [vmem:[#allocation8 + $0x8] sm:$0xff] }
  0x32   :  { %244 = vmatpush.msra.mxu3 %v200_v56  ;;  %171 = vmatpush.msra.mxu1 %v89_v62 }
  0x33   :  { %153 = vmatpush.msra.mxu0 %v82_v53  ;;  %191 = vmatpush.msra.mxu2 %v90_v0 }
  0x34   :  { %154 = vmatmul.f32.vlgmr.msra.gmra.mxu0 %v81_v57  ;;  %245 = vmatpush.msra.mxu3 %v198_v60 }
  0x35   :  { %250 = vmatpush.msrb.mxu0 %v229_v55  ;;  %246 = vmatmul.f32.vlgmr.msra.gmra.mxu3 %v517_v61 }
  0x36   :  { %172 = vmatpush.msra.mxu1 %v86_v1  ;;  %192 = vmatpush.msra.mxu2 %v87_v3 }
  0x37   :  { %251 = vmatpush.msrb.mxu0 %v227_v59 }
  0x38   :  { %173 = vmatpush.msra.mxu1 %v83_v4  ;;  %193 = vmatpush.msra.mxu2 %v84_v6 }
  0x39   :  { %252 = vmatpush.msrb.mxu0 %v225_v63  ;;  %174 = vmatmul.f32.vlgmr.msra.gmra.mxu1 %v81_v57 }
  0x3a   :  { %194 = vmatmul.f32.vlgmr.msra.gmra.mxu2 %v81_v57 }
  0x3b   :  { %253 = vmatpush.msrb.mxu0 %v223_v2 }
  0x3d   :  { %254 = vmatpush.msrb.mxu0 %v221_v5 }
  0x3f   :  { %255 = vmatpush.msrb.mxu0 %v219_v7 }
  0x41   :  { %256 = vmatpush.msrb.mxu0 %v217_v8 }
  0x43   :  { %257 = vmatpush.msrb.mxu0 %v215_v9 }
  0x45   :  { %258 = vmatpush.msrb.mxu0 %v213_v10 }
  0x47   :  { %259 = vmatpush.msrb.mxu0 %v211_v11 }
  0x49   :  { %260 = vmatpush.msrb.mxu0 %v209_v12 }
  0x4b   :  { %261 = vmatpush.msrb.mxu0 %v207_v13 }
  0x4d   :  { %262 = vmatpush.msrb.mxu0 %v205_v14 }
  0x4f   :  { %263 = vmatpush.msrb.mxu0 %v203_v15 }
  0x51   :  { %264 = vmatpush.msrb.mxu0 %v201_v16 }
  0x53   :  { %265 = vmatpush.msrb.mxu0 %v199_v17 }
  0x54   :  { %266 = vmatmul.f32.vlgmr.msrb.gmra.mxu0 %v517_v61 }
  0xb1   :  { %v155_v19 = vpop.f32.mrf.mxu0 }
  0xb2   :  { %v156_v23 = vadd.f32 %v155_v19, %v132_v20 }
  0xb6   :  { %v175_v22 = vpop.f32.mrf.mxu1 }
  0xb7   :  { %v176_v25 = vadd.f32 %v175_v22, %v133_v21 }
  0xb8   :  { %v247_v24 = vpop.f32.mrf.mxu3 }
  0xb9   :  { %v270_v26 = vadd.f32 %v247_v24, %v156_v23 }
  0xbb   :  { %330 = vtanh.f32 %v270_v26 }
  0xbd   :  { %v195_v35 = vpop.f32.mrf.mxu2 }
  0xbe   :  { %v196_v36 = vadd.f32 %v195_v35, %v134_v34 }
  0xc1   :  { %v331_v30 = vpop.eup %330 }
  0xc2   :  { %v273_v33 = vadd.f32 1.0, %v331_v30 }
  0xc4   :  { %v295_v37 = vmul.f32 %v273_v33, %v517_v61 }
  0xc6   :  { %v296_v40 = vadd.f32 %v295_v37, %v196_v36 }
  0xd1   :  { %v267_v27 = vpop.f32.mrf.mxu0 }
  0xd2   :  { %v271_v28 = vadd.f32 %v267_v27, %v176_v25 }
  0xd4   :  { %v320_v29 = vmul.f32 -1.442695, %v271_v28 }
  0xd6   :  { %332 = vpow2.f32 %v320_v29 }
  0xdc   :  { %v333_v31 = vpop.eup %332 }
  0xdd   :  { %v277_v32 = vadd.f32 1.0, %v333_v31 }
  0xdf   :  { %334 = vrcp.f32 %v277_v32  ;;  %v289_v42 = vand.u32 2147483648, %v277_v32  ;;  %v287_v44 = vand.u32 2147483647, %v277_v32  ;;  %vm283_vm1 = vweird.f32 %v277_v32 }
  0xe0   :  { %336 = vtanh.f32 %v296_v40 }
  0xe1   :  { %v290_v46 = vor.u32 1.1754944e-38, %v289_v42  ;;  %vm288_vm3 = vcmp.eq.f32.partialorder %v287_v44, 8.507059e+37 }
  0xe5   :  { %v335_v38 = vpop.eup %334 }
  0xe6   :  { %v279_v39 = vmul.f32 %v335_v38, %v277_v32  ;;  %vm284_vm0 = vweird.f32 %v335_v38  ;;  %v337_v50 = vpop.eup %336 }
  0xe7   :  { %vm285_vm2 = vmor %vm283_vm1, %vm284_vm0 }
  0xe8   :  { %v280_v41 = vsub.f32 1.0, %v279_v39 }
  0xea   :  { %v281_v43 = vmul.f32 %v335_v38, %v280_v41 }
  0xec   :  { %v282_v45 = vadd.f32 %v335_v38, %v281_v43 }
  0xee   :  { %v286_v47 = vsel %vm285_vm2, %v335_v38, %v282_v45 }
  0xef   :  { %v291_v48 = vsel %vm288_vm3, %v290_v46, %v286_v47 }
  0xf0   :  { %v294_v49 = vsub.f32 1.0, %v291_v48  ;;  %v293_v51 = vmul.f32 %v291_v48, %v517_v61 }
  0xf2   :  { %v298_v52 = vmul.f32 %v337_v50, %v294_v49 }
  0xf4   :  { %v299_v53 = vadd.f32 %v298_v52, %v293_v51 }
  0xf6   :  { %300 = vst [vmem:[#allocation10] sm:$0xff] %v299_v53 }
  0xf7   :  { %311 = dma.vmem_to_hbm [thread:$0]  %s307_s15, 128, %s309_s18, [#allocation4]  }
  0xf8   :  { %464 = dma.done.wait [#allocation4], 128  }
  0xf9   :  { %465 = vsyncadd [#allocation4], 4294967168 }
  0xfa   :  { %316 = vsyncpa [#allocation3], 1 }
  0xfb   :  { %317 = vsyncpa [#allocation6], 1 }
  0xfc   :  { %318 = vsyncpa [#allocation9], 1 }
  0xfd   :  { %319 = vsyncpa [#allocation4], 1 }

// kernel: tpu_custom_call.1
= control target key start
LH: loop header
LB: loop body
LE: loop exit
PB: predicated region body
PF: predicated region fallthrough
CT: control target
= control target key end

     0   :  { %10 = vsyncpa [#allocation3], 0  ;;  %s529_s0 = inlined_call_operand.hbm [shape: f32[8,128], index: 0, kind: input, shape index: {}]   ;;  %s530_s1 = inlined_call_operand.hbm [shape: f32[8,128], index: 1, kind: input, shape index: {}]   ;;  %s531_s2 = inlined_call_operand.hbm [shape: f32[128,384], index: 2, kind: input, shape index: {}]   ;;  %s532_s3 = inlined_call_operand.hbm [shape: f32[128,256], index: 3, kind: input, shape index: {}]   ;;  %s533_s4 = inlined_call_operand.vmem [shape: f32[1,384], index: 4, kind: input, shape index: {}]   ;;  %s534_s5 = inlined_call_operand.hbm [shape: f32[8,128], index: 5, kind: output, shape index: {}]  }
   0x1   :  { %11 = vsyncpa [#allocation6], 0 }
   0x2   :  { %12 = vsyncpa [#allocation9], 0  ;;  %s30_s20 = sshll.u32 %s530_s1, 4  ;;  %s31_s20 = int_to_ptr.hbm [resolvable:$true] %s30_s20 }
   0x3   :  { %13 = vsyncpa [#allocation4], 0  ;;  %s466_s21 = smov [#allocation5]   ;;  %s19_s25 = sshll.u32 %s529_s0, 4  ;;  %s20_s25 = int_to_ptr.hbm [resolvable:$true] %s19_s25 }
   0x4   :  { %s32_s22 = sshll.u32 %s466_s21, 4  ;;  %s467_s26 = smov [#allocation2]   ;;  %s33_s22 = int_to_ptr.vmem [resolvable:$true] %s32_s22 }
   0x5   :  { %35 = dma.hbm_to_vmem [thread:$0]  %s31_s20, 128, %s33_s22, [#allocation6]  }
   0x6   :  { %s21_s27 = sshll.u32 %s467_s26, 4  ;;  %s40_s30 = sshll.u32 %s531_s2, 4  ;;  %s22_s27 = int_to_ptr.vmem [resolvable:$true] %s21_s27  ;;  %s41_s30 = int_to_ptr.hbm [resolvable:$true] %s40_s30 }
   0x7   :  { %24 = dma.hbm_to_vmem [thread:$0]  %s20_s25, 128, %s22_s27, [#allocation3]  }
   0x8   :  { %s468_s1 = smov [#allocation7]   ;;  %s53_s9 = sshll.u32 %s532_s3, 4  ;;  %s54_s9 = int_to_ptr.hbm [resolvable:$true] %s53_s9 }
   0x9   :  { %s42_s6 = sshll.u32 %s468_s1, 4  ;;  %s469_s10 = smov 384   ;;  %s43_s6 = int_to_ptr.vmem [resolvable:$true] %s42_s6 }
   0xa   :  { %s470_s0 = smov 24   ;;  %s471_s11 = smov [#allocation8]  }
   0xb   :  { %48 = dma.hbm_to_vmem [thread:$0]  %s41_s30, 6144, %s43_s6, [#allocation6], %s469_s10, %s469_s10, %s470_s0  }
   0xc   :  { %s55_s12 = sshll.u32 %s471_s11, 4  ;;  %s472_s13 = smov 256   ;;  %s56_s12 = int_to_ptr.vmem [resolvable:$true] %s55_s12 }
   0xd   :  { %s473_s14 = smov 16  }
   0xe   :  { %61 = dma.hbm_to_vmem [thread:$0]  %s54_s9, 4096, %s56_s12, [#allocation9], %s472_s13, %s472_s13, %s473_s14  }
   0xf   :  { %458 = dma.done.wait [#allocation3], 128  }
  0x10   :  { %459 = vsyncadd [#allocation3], 4294967168 }
  0x11   :  { %460 = dma.done.wait [#allocation6], 6272  }
  0x12   :  { %461 = vsyncadd [#allocation6], 4294961024 }
  0x13   :  { %462 = dma.done.wait [#allocation9], 4096  }
  0x14   :  { %463 = vsyncadd [#allocation9], 4294963200  ;;  %v127_v0 = vld [vmem:[#allocation7 + $0x168] sm:$0xff]  ;;  %v124_v1 = vld [vmem:[#allocation7 + $0x150] sm:$0xff]  ;;  %s308_s18 = sshll.u32 %s534_s5, 4  ;;  %s309_s18 = int_to_ptr.hbm [resolvable:$true] %s308_s18 }
  0x15   :  { %138 = vmatpush.msra.mxu0 %v127_v0  ;;  %v121_v2 = vld [vmem:[#allocation7 + $0x138] sm:$0xff]  ;;  %v228_v3 = vld [vmem:[#allocation8 + $0xf0] sm:$0xff]  ;;  %v118_v4 = vld [vmem:[#allocation7 + $0x120] sm:$0xff] }
  0x16   :  { %230 = vmatpush.msra.mxu3 %v228_v3  ;;  %v226_v5 = vld [vmem:[#allocation8 + $0xe0] sm:$0xff]  ;;  %v224_v6 = vld [vmem:[#allocation8 + $0xd0] sm:$0xff]  ;;  %v115_v7 = vld [vmem:[#allocation7 + $0x108] sm:$0xff] }
  0x17   :  { %139 = vmatpush.msra.mxu0 %v124_v1  ;;  %v128_v8 = vld [vmem:[#allocation7 + $0x170] sm:$0xff]  ;;  %v222_v9 = vld [vmem:[#allocation8 + $0xc0] sm:$0xff]  ;;  %v129_v10 = vld [vmem:[#allocation7 + $0x178] sm:$0xff] }
  0x18   :  { %231 = vmatpush.msra.mxu3 %v226_v5  ;;  %158 = vmatpush.msra.mxu1 %v128_v8  ;;  %v112_v11 = vld [vmem:[#allocation7 + $0xf0] sm:$0xff]  ;;  %v125_v12 = vld [vmem:[#allocation7 + $0x158] sm:$0xff]  ;;  %v126_v14 = vld [vmem:[#allocation7 + $0x160] sm:$0xff] }
  0x19   :  { %140 = vmatpush.msra.mxu0 %v121_v2  ;;  %178 = vmatpush.msra.mxu2 %v129_v10  ;;  %v220_v13 = vld [vmem:[#allocation8 + $0xb0] sm:$0xff]  ;;  %v122_v15 = vld [vmem:[#allocation7 + $0x140] sm:$0xff]  ;;  %v109_v16 = vld [vmem:[#allocation7 + $0xd8] sm:$0xff] }
  0x1a   :  { %232 = vmatpush.msra.mxu3 %v224_v6  ;;  %159 = vmatpush.msra.mxu1 %v125_v12  ;;  %v123_v17 = vld [vmem:[#allocation7 + $0x148] sm:$0xff]  ;;  %v218_v19 = vld [vmem:[#allocation8 + $0xa0] sm:$0xff]  ;;  %v120_v20 = vld [vmem:[#allocation7 + $0x130] sm:$0xff] }
  0x1b   :  { %141 = vmatpush.msra.mxu0 %v118_v4  ;;  %179 = vmatpush.msra.mxu2 %v126_v14  ;;  %v119_v18 = vld [vmem:[#allocation7 + $0x128] sm:$0xff]  ;;  %v106_v21 = vld [vmem:[#allocation7 + $0xc0] sm:$0xff]  ;;  %v116_v22 = vld [vmem:[#allocation7 + $0x110] sm:$0xff] }
  0x1c   :  { %233 = vmatpush.msra.mxu3 %v222_v9  ;;  %160 = vmatpush.msra.mxu1 %v122_v15  ;;  %v216_v23 = vld [vmem:[#allocation8 + $0x90] sm:$0xff]  ;;  %v117_v24 = vld [vmem:[#allocation7 + $0x118] sm:$0xff]  ;;  %v103_v25 = vld [vmem:[#allocation7 + $0xa8] sm:$0xff] }
  0x1d   :  { %142 = vmatpush.msra.mxu0 %v115_v7  ;;  %180 = vmatpush.msra.mxu2 %v123_v17  ;;  %v113_v26 = vld [vmem:[#allocation7 + $0xf8] sm:$0xff]  ;;  %v214_v27 = vld [vmem:[#allocation8 + $0x80] sm:$0xff]  ;;  %v100_v29 = vld [vmem:[#allocation7 + $0x90] sm:$0xff] }
  0x1e   :  { %234 = vmatpush.msra.mxu3 %v220_v13  ;;  %161 = vmatpush.msra.mxu1 %v119_v18  ;;  %v114_v28 = vld [vmem:[#allocation7 + $0x100] sm:$0xff]  ;;  %v212_v31 = vld [vmem:[#allocation8 + $0x70] sm:$0xff]  ;;  %v111_v32 = vld [vmem:[#allocation7 + $0xe8] sm:$0xff] }
  0x1f   :  { %143 = vmatpush.msra.mxu0 %v112_v11  ;;  %181 = vmatpush.msra.mxu2 %v120_v20  ;;  %v110_v30 = vld [vmem:[#allocation7 + $0xe0] sm:$0xff]  ;;  %v97_v33 = vld [vmem:[#allocation7 + $0x78] sm:$0xff]  ;;  %v107_v34 = vld [vmem:[#allocation7 + $0xc8] sm:$0xff] }
  0x20   :  { %235 = vmatpush.msra.mxu3 %v218_v19  ;;  %162 = vmatpush.msra.mxu1 %v116_v22  ;;  %v210_v35 = vld [vmem:[#allocation8 + $0x60] sm:$0xff]  ;;  %v108_v36 = vld [vmem:[#allocation7 + $0xd0] sm:$0xff]  ;;  %v105_v40 = vld [vmem:[#allocation7 + $0xb8] sm:$0xff] }
  0x21   :  { %144 = vmatpush.msra.mxu0 %v109_v16  ;;  %182 = vmatpush.msra.mxu2 %v117_v24  ;;  %v94_v37 = vld [vmem:[#allocation7 + $0x60] sm:$0xff]  ;;  %v104_v38 = vld [vmem:[#allocation7 + $0xb0] sm:$0xff]  ;;  %v91_v41 = vld [vmem:[#allocation7 + $0x48] sm:$0xff] }
  0x22   :  { %236 = vmatpush.msra.mxu3 %v216_v23  ;;  %163 = vmatpush.msra.mxu1 %v113_v26  ;;  %v208_v39 = vld [vmem:[#allocation8 + $0x50] sm:$0xff]  ;;  %v101_v42 = vld [vmem:[#allocation7 + $0x98] sm:$0xff]  ;;  %v206_v43 = vld [vmem:[#allocation8 + $0x40] sm:$0xff] }
  0x23   :  { %145 = vmatpush.msra.mxu0 %v106_v21  ;;  %183 = vmatpush.msra.mxu2 %v114_v28  ;;  %v102_v44 = vld [vmem:[#allocation7 + $0xa0] sm:$0xff]  ;;  %v88_v45 = vld [vmem:[#allocation7 + $0x30] sm:$0xff]  ;;  %v99_v48 = vld [vmem:[#allocation7 + $0x88] sm:$0xff] }
  0x24   :  { %237 = vmatpush.msra.mxu3 %v214_v27  ;;  %164 = vmatpush.msra.mxu1 %v110_v30  ;;  %v98_v46 = vld [vmem:[#allocation7 + $0x80] sm:$0xff]  ;;  %v204_v47 = vld [vmem:[#allocation8 + $0x30] sm:$0xff]  ;;  %v85_v49 = vld [vmem:[#allocation7 + $0x18] sm:$0xff] }
  0x25   :  { %146 = vmatpush.msra.mxu0 %v103_v25  ;;  %184 = vmatpush.msra.mxu2 %v111_v32  ;;  %v95_v50 = vld [vmem:[#allocation7 + $0x68] sm:$0xff]  ;;  %v202_v51 = vld [vmem:[#allocation8 + $0x20] sm:$0xff]  ;;  %v96_v52 = vld [vmem:[#allocation7 + $0x70] sm:$0xff] }
  0x26   :  { %238 = vmatpush.msra.mxu3 %v212_v31  ;;  %165 = vmatpush.msra.mxu1 %v107_v34  ;;  %v82_v53 = vld [vmem:[#allocation7] sm:$0xff]  ;;  %v92_v54 = vld [vmem:[#allocation7 + $0x50] sm:$0xff]  ;;  %v229_v55 = vld [vmem:[#allocation8 + $0xf8] sm:$0xff] }
  0x27   :  { %147 = vmatpush.msra.mxu0 %v100_v29  ;;  %185 = vmatpush.msra.mxu2 %v108_v36  ;;  %v200_v56 = vld [vmem:[#allocation8 + $0x10] sm:$0xff]  ;;  %v93_v58 = vld [vmem:[#allocation7 + $0x58] sm:$0xff]  ;;  %v227_v59 = vld [vmem:[#allocation8 + $0xe8] sm:$0xff] }
  0x28   :  { %239 = vmatpush.msra.mxu3 %v210_v35  ;;  %166 = vmatpush.msra.mxu1 %v104_v38  ;;  %v81_v57 = vld [vmem:[#allocation2] sm:$0xff]  ;;  %v198_v60 = vld [vmem:[#allocation8] sm:$0xff]  ;;  %v517_v61 = vld [vmem:[#allocation5] sm:$0xff] }
  0x29   :  { %148 = vmatpush.msra.mxu0 %v97_v33  ;;  %186 = vmatpush.msra.mxu2 %v105_v40  ;;  %v89_v62 = vld [vmem:[#allocation7 + $0x38] sm:$0xff]  ;;  %v90_v0 = vld [vmem:[#allocation7 + $0x40] sm:$0xff]  ;;  %v223_v2 = vld [vmem:[#allocation8 + $0xc8] sm:$0xff] }
  0x2a   :  { %240 = vmatpush.msra.mxu3 %v208_v39  ;;  %167 = vmatpush.msra.mxu1 %v101_v42  ;;  %v225_v63 = vld [vmem:[#allocation8 + $0xd8] sm:$0xff]  ;;  %v86_v1 = vld [vmem:[#allocation7 + $0x20] sm:$0xff]  ;;  %v87_v3 = vld [vmem:[#allocation7 + $0x28] sm:$0xff] }
  0x2b   :  { %149 = vmatpush.msra.mxu0 %v94_v37  ;;  %187 = vmatpush.msra.mxu2 %v102_v44  ;;  %v83_v4 = vld [vmem:[#allocation7 + $0x8] sm:$0xff]  ;;  %v221_v5 = vld [vmem:[#allocation8 + $0xb8] sm:$0xff]  ;;  %v84_v6 = vld [vmem:[#allocation7 + $0x10] sm:$0xff] }
  0x2c   :  { %241 = vmatpush.msra.mxu3 %v206_v43  ;;  %168 = vmatpush.msra.mxu1 %v98_v46  ;;  %v219_v7 = vld [vmem:[#allocation8 + $0xa8] sm:$0xff]  ;;  %v217_v8 = vld [vmem:[#allocation8 + $0x98] sm:$0xff]  ;;  %v130_v18 = vld [vmem:[%s533_s4] sm:$0x7]  ;;  %s474_s4 = smov [#allocation10]  }
  0x2d   :  { %150 = vmatpush.msra.mxu0 %v91_v41  ;;  %188 = vmatpush.msra.mxu2 %v99_v48  ;;  %v215_v9 = vld [vmem:[#allocation8 + $0x88] sm:$0xff]  ;;  %v213_v10 = vld [vmem:[#allocation8 + $0x78] sm:$0xff]  ;;  %v132_v20 = vperm.slane %v130_v18, 0  ;;  %v133_v21 = vperm.slane %v130_v18, 1  ;;  %v134_v34 = vperm.slane %v130_v18, 2  ;;  %s306_s15 = sshll.u32 %s474_s4, 4  ;;  %s307_s15 = int_to_ptr.vmem [resolvable:$true] %s306_s15 }
  0x2e   :  { %242 = vmatpush.msra.mxu3 %v204_v47  ;;  %169 = vmatpush.msra.mxu1 %v95_v50  ;;  %v211_v11 = vld [vmem:[#allocation8 + $0x68] sm:$0xff]  ;;  %v209_v12 = vld [vmem:[#allocation8 + $0x58] sm:$0xff] }
  0x2f   :  { %151 = vmatpush.msra.mxu0 %v88_v45  ;;  %189 = vmatpush.msra.mxu2 %v96_v52  ;;  %v207_v13 = vld [vmem:[#allocation8 + $0x48] sm:$0xff]  ;;  %v205_v14 = vld [vmem:[#allocation8 + $0x38] sm:$0xff] }
  0x30   :  { %243 = vmatpush.msra.mxu3 %v202_v51  ;;  %170 = vmatpush.msra.mxu1 %v92_v54  ;;  %v203_v15 = vld [vmem:[#allocation8 + $0x28] sm:$0xff]  ;;  %v201_v16 = vld [vmem:[#allocation8 + $0x18] sm:$0xff] }
  0x31   :  { %152 = vmatpush.msra.mxu0 %v85_v49  ;;  %190 = vmatpush.msra.mxu2 %v93_v58  ;;  %v199_v17 = vld [vmem:[#allocation8 + $0x8] sm:$0xff] }
  0x32   :  { %244 = vmatpush.msra.mxu3 %v200_v56  ;;  %171 = vmatpush.msra.mxu1 %v89_v62 }
  0x33   :  { %153 = vmatpush.msra.mxu0 %v82_v53  ;;  %191 = vmatpush.msra.mxu2 %v90_v0 }
  0x34   :  { %154 = vmatmul.f32.vlgmr.msra.gmra.mxu0 %v81_v57  ;;  %245 = vmatpush.msra.mxu3 %v198_v60 }
  0x35   :  { %250 = vmatpush.msrb.mxu0 %v229_v55  ;;  %246 = vmatmul.f32.vlgmr.msra.gmra.mxu3 %v517_v61 }
  0x36   :  { %172 = vmatpush.msra.mxu1 %v86_v1  ;;  %192 = vmatpush.msra.mxu2 %v87_v3 }
  0x37   :  { %251 = vmatpush.msrb.mxu0 %v227_v59 }
  0x38   :  { %173 = vmatpush.msra.mxu1 %v83_v4  ;;  %193 = vmatpush.msra.mxu2 %v84_v6 }
  0x39   :  { %252 = vmatpush.msrb.mxu0 %v225_v63  ;;  %174 = vmatmul.f32.vlgmr.msra.gmra.mxu1 %v81_v57 }
  0x3a   :  { %194 = vmatmul.f32.vlgmr.msra.gmra.mxu2 %v81_v57 }
  0x3b   :  { %253 = vmatpush.msrb.mxu0 %v223_v2 }
  0x3d   :  { %254 = vmatpush.msrb.mxu0 %v221_v5 }
  0x3f   :  { %255 = vmatpush.msrb.mxu0 %v219_v7 }
  0x41   :  { %256 = vmatpush.msrb.mxu0 %v217_v8 }
  0x43   :  { %257 = vmatpush.msrb.mxu0 %v215_v9 }
  0x45   :  { %258 = vmatpush.msrb.mxu0 %v213_v10 }
  0x47   :  { %259 = vmatpush.msrb.mxu0 %v211_v11 }
  0x49   :  { %260 = vmatpush.msrb.mxu0 %v209_v12 }
  0x4b   :  { %261 = vmatpush.msrb.mxu0 %v207_v13 }
  0x4d   :  { %262 = vmatpush.msrb.mxu0 %v205_v14 }
  0x4f   :  { %263 = vmatpush.msrb.mxu0 %v203_v15 }
  0x51   :  { %264 = vmatpush.msrb.mxu0 %v201_v16 }
  0x53   :  { %265 = vmatpush.msrb.mxu0 %v199_v17 }
  0x54   :  { %266 = vmatmul.f32.vlgmr.msrb.gmra.mxu0 %v517_v61 }
  0xb1   :  { %v155_v19 = vpop.f32.mrf.mxu0 }
  0xb2   :  { %v156_v23 = vadd.f32 %v155_v19, %v132_v20 }
  0xb6   :  { %v175_v22 = vpop.f32.mrf.mxu1 }
  0xb7   :  { %v176_v25 = vadd.f32 %v175_v22, %v133_v21 }
  0xb8   :  { %v247_v24 = vpop.f32.mrf.mxu3 }
  0xb9   :  { %v270_v26 = vadd.f32 %v247_v24, %v156_v23 }
  0xbb   :  { %330 = vtanh.f32 %v270_v26 }
  0xbd   :  { %v195_v35 = vpop.f32.mrf.mxu2 }
  0xbe   :  { %v196_v36 = vadd.f32 %v195_v35, %v134_v34 }
  0xc1   :  { %v331_v30 = vpop.eup %330 }
  0xc2   :  { %v273_v33 = vadd.f32 1.0, %v331_v30 }
  0xc4   :  { %v295_v37 = vmul.f32 %v273_v33, %v517_v61 }
  0xc6   :  { %v296_v40 = vadd.f32 %v295_v37, %v196_v36 }
  0xd1   :  { %v267_v27 = vpop.f32.mrf.mxu0 }
  0xd2   :  { %v271_v28 = vadd.f32 %v267_v27, %v176_v25 }
  0xd4   :  { %v320_v29 = vmul.f32 -1.442695, %v271_v28 }
  0xd6   :  { %332 = vpow2.f32 %v320_v29 }
  0xdc   :  { %v333_v31 = vpop.eup %332 }
  0xdd   :  { %v277_v32 = vadd.f32 1.0, %v333_v31 }
  0xdf   :  { %334 = vrcp.f32 %v277_v32  ;;  %v289_v42 = vand.u32 2147483648, %v277_v32  ;;  %v287_v44 = vand.u32 2147483647, %v277_v32  ;;  %vm283_vm1 = vweird.f32 %v277_v32 }
  0xe0   :  { %336 = vtanh.f32 %v296_v40 }
  0xe1   :  { %v290_v46 = vor.u32 1.1754944e-38, %v289_v42  ;;  %vm288_vm3 = vcmp.eq.f32.partialorder %v287_v44, 8.507059e+37 }
  0xe5   :  { %v335_v38 = vpop.eup %334 }
  0xe6   :  { %v279_v39 = vmul.f32 %v335_v38, %v277_v32  ;;  %vm284_vm0 = vweird.f32 %v335_v38  ;;  %v337_v50 = vpop.eup %336 }
  0xe7   :  { %vm285_vm2 = vmor %vm283_vm1, %vm284_vm0 }
  0xe8   :  { %v280_v41 = vsub.f32 1.0, %v279_v39 }
  0xea   :  { %v281_v43 = vmul.f32 %v335_v38, %v280_v41 }
  0xec   :  { %v282_v45 = vadd.f32 %v335_v38, %v281_v43 }
  0xee   :  { %v286_v47 = vsel %vm285_vm2, %v335_v38, %v282_v45 }
  0xef   :  { %v291_v48 = vsel %vm288_vm3, %v290_v46, %v286_v47 }
  0xf0   :  { %v294_v49 = vsub.f32 1.0, %v291_v48  ;;  %v293_v51 = vmul.f32 %v291_v48, %v517_v61 }
  0xf2   :  { %v298_v52 = vmul.f32 %v337_v50, %v294_v49 }
  0xf4   :  { %v299_v53 = vadd.f32 %v298_v52, %v293_v51 }
  0xf6   :  { %300 = vst [vmem:[#allocation10] sm:$0xff] %v299_v53 }
  0xf7   :  { %311 = dma.vmem_to_hbm [thread:$0]  %s307_s15, 128, %s309_s18, [#allocation4]  }
  0xf8   :  { %464 = dma.done.wait [#allocation4], 128  }
  0xf9   :  { %465 = vsyncadd [#allocation4], 4294967168 }
  0xfa   :  { %316 = vsyncpa [#allocation3], 1 }
  0xfb   :  { %317 = vsyncpa [#allocation6], 1 }
  0xfc   :  { %318 = vsyncpa [#allocation9], 1 }
  0xfd   :  { %319 = vsyncpa [#allocation4], 1 }

</bundles_post_ra>
